<compile_context>
chip_gen: v7x
topology: tpu7x:2x2x1
jax: 0.10.0
libtpu: 0.0.40
codegen_flags: <defaults>
</compile_context>

<pallas_src>
import math

import numpy as np
import jax
import jax.numpy as jnp
from jax.experimental import pallas as pl
from jax.experimental.pallas import tpu as pltpu


# ----------------------------------------------------------------------------
# Haar wavelet analysis matrices (plain numpy, computed once at init).
# ----------------------------------------------------------------------------
def _haar_step(size, filt):
    m = np.zeros((size // 2, size), dtype=np.float64)
    for i in range(size // 2):
        m[i, 2 * i] = filt[0]
        m[i, 2 * i + 1] = filt[1]
    return m


def haar_analysis_matrices(n, level):
    """P, Q of shape (n / 2**level, n): low-pass cascade and detail at `level` (float64)."""
    lo = np.array([1.0, 1.0]) / np.sqrt(2.0)
    hi = np.array([1.0, -1.0]) / np.sqrt(2.0)
    acc = np.eye(n, dtype=np.float64)
    size = n
    for _ in range(level - 1):
        acc = _haar_step(size, lo) @ acc
        size //= 2
    P = _haar_step(size, lo) @ acc
    Q = _haar_step(size, hi) @ acc
    return P, Q


def calc_possible_levels(size):
    # mirrors Levels.calc_possible_levels == range(pywt.dwt_max_level(size,'haar')+1)
    max_level = int(math.floor(math.log2(size)))
    return list(range(max_level + 1))


def _round_up(v, m):
    return ((v + m - 1) // m) * m


# ----------------------------------------------------------------------------
# The fused kernel: one MXU matmul + bias per batch tile.
# ----------------------------------------------------------------------------
def _wavpool_kernel(x_ref, w_ref, b_ref, o_ref):
    # x_ref : (TB, N*N)  f32   current batch tile, flattened images
    # w_ref : (N*N, Op)  bf16  whole forward pass folded into one matrix
    # b_ref : (1, Op)    f32   whole forward pass folded bias
    # o_ref : (TB, Op)   f32
    xb = x_ref[...].astype(jnp.bfloat16)
    o_ref[...] = jnp.dot(xb, w_ref[...], preferred_element_type=jnp.float32) + b_ref[...]


def wavpool_forward(params, meta, x, *, batch_tile=256):
    B, N, _ = x.shape
    assert N == meta["in_size"]
    NN = N * N
    Op = meta["Op"]

    x_flat = x.reshape(B, NN)                      # host-side reshape (free)

    # Batch tiling: >= 8 rows (sublane-aligned), default tile 256 to fill the
    # 256-wide MXU (v6e/v7x); split a single-tile batch in two so both v7x
    # TensorCores get work.
    Bp = _round_up(B, 8)
    if Bp <= batch_tile:
        TB = Bp
        if Bp % 16 == 0:
            TB = Bp // 2
    else:
        TB = batch_tile
        Bp = _round_up(B, TB)
    if Bp != B:
        x_flat = jnp.pad(x_flat, ((0, Bp - B), (0, 0)))

    out = pl.pallas_call(
        _wavpool_kernel,
        grid=(Bp // TB,),
        in_specs=[
            pl.BlockSpec((TB, NN), lambda i: (i, 0)),   # x tile
            pl.BlockSpec((NN, Op), lambda i: (0, 0)),   # constants: fetched once
            pl.BlockSpec((1, Op), lambda i: (0, 0)),
        ],
        out_specs=pl.BlockSpec((TB, Op), lambda i: (i, 0)),
        out_shape=jax.ShapeDtypeStruct((Bp, Op), jnp.float32),
        compiler_params=pltpu.CompilerParams(
            dimension_semantics=("parallel",),
            vmem_limit_bytes=16 * 1024 * 1024,
        ),
    )(x_flat, params["w_total"], params["b_total"])
    return out[:B, :meta["out_channels"]]


# ----------------------------------------------------------------------------
# Init: deterministic parameters + exact float64 host-side fold of the whole
# affine chain into (W_total, b_total).
# ----------------------------------------------------------------------------
def init_wavpool(key, *, in_size, hidden_size, out_channels,
                 pooling_size=None, pooling_mode="average",
                 hidden_pooling=None, level_pooling=None,
                 hidden_layer_scaling=False):
    if pooling_mode != "average":
        raise NotImplementedError("only pooling_mode='average' is implemented")

    possible_levels = [l for l in calc_possible_levels(in_size) if l != 0]
    n_levels = len(possible_levels)
    if hidden_layer_scaling:
        hidden_sizes = [int(hidden_size / (i + 1)) for i in range(n_levels)]
        hidden_sizes.reverse()
    else:
        hidden_sizes = [int(hidden_size)] * n_levels
    max_hidden = max(hidden_sizes)

    if hidden_pooling is not None:
        assert level_pooling is not None
        pool_kernel = (int(hidden_pooling), 1, int(level_pooling))
    else:
        p = int(pooling_size)
        pool_kernel = (p, p, p)
    k0, k1, k2 = pool_kernel
    d0, d1, d2 = max_hidden // k0, 3 // k1, n_levels // k2
    pool_out = d0 * d1 * d2

    # ---- raw parameters (same init scheme / RNG layout as before) -----------
    keys = jax.random.split(key, 2 * n_levels + 2)
    levels = []
    for i, (lev, h) in enumerate(zip(possible_levels, hidden_sizes)):
        s = in_size // (2 ** lev)
        fan_in = s * s
        bound = 1.0 / math.sqrt(fan_in)
        W = jax.random.uniform(keys[2 * i], (3, h, fan_in), jnp.float32, -bound, bound)
        b = jax.random.uniform(keys[2 * i + 1], (3, h), jnp.float32, -bound, bound)
        P64, Q64 = haar_analysis_matrices(in_size, lev)
        levels.append(dict(level=lev, hidden=h, s=s,
                           P64=P64, Q64=Q64,
                           P=jnp.asarray(P64.astype(np.float32)),
                           Q=jnp.asarray(Q64.astype(np.float32)),
                           W=W, b=b))

    bound = 1.0 / math.sqrt(pool_out)
    W_out = jax.random.uniform(keys[-2], (out_channels, pool_out), jnp.float32, -bound, bound)
    b_out = jax.random.uniform(keys[-1], (out_channels,), jnp.float32, -bound, bound)

    # ---- exact fold of the whole forward pass (float64, host-side numpy) ----
    # hidden[b, li, c, hh] = sum_{n,m} x[b,n,m] * A_c[hh,n,m] + b_l[c,hh]
    #   with A_LH = P^T W P-style contractions below (Haar detail + MicroWav dense).
    # Then front zero-pad to max_hidden, AvgPool3d(kernel=stride, floor mode),
    # and the output Linear are folded column-by-column into W_total / b_total.
    N = in_size
    NN = N * N
    O = out_channels
    Op = _round_up(O, 128)

    W_out64 = np.asarray(W_out, np.float64)
    inv_vol = 1.0 / float(k0 * k1 * k2)
    W_total = np.zeros((NN, O), np.float64)
    b_total = np.asarray(b_out, np.float64).copy()

    for li, lv in enumerate(levels):
        s, h = lv["s"], lv["hidden"]
        P64, Q64 = lv["P64"], lv["Q64"]                       # (s, N)
        Wl = np.asarray(lv["W"], np.float64).reshape(3, h, s, s)
        bl = np.asarray(lv["b"], np.float64)                  # (3, h)

        # Per-coefficient linear maps from the flattened image to each hidden unit:
        #   LH: rows low-pass (P), cols detail (Q);  HL: rows Q, cols P;  HH: rows Q, cols Q.
        A = [
            np.einsum("rn,cm,hrc->hnm", P64, Q64, Wl[0]),     # LH
            np.einsum("rn,cm,hrc->hnm", Q64, P64, Wl[1]),     # HL
            np.einsum("rn,cm,hrc->hnm", Q64, Q64, Wl[2]),     # HH
        ]

        for c in range(3):
            for hh in range(h):
                m_idx = (max_hidden - h) + hh                 # position after front zero-pad
                if m_idx < d0 * k0 and c < d1 * k1 and li < d2 * k2:
                    col = ((m_idx // k0) * d1 + (c // k1)) * d2 + (li // k2)
                    w_vec = W_out64[:, col] * inv_vol         # (O,)
                    W_total += np.outer(A[c][hh].reshape(NN), w_vec)
                    b_total += bl[c, hh] * w_vec

    W_total_p = np.zeros((NN, Op), np.float32)
    W_total_p[:, :O] = W_total.astype(np.float32)
    b_total_p = np.zeros((1, Op), np.float32)
    b_total_p[0, :O] = b_total.astype(np.float32)

    params = dict(levels=levels, W_out=W_out, b_out=b_out,
                  w_total=jnp.asarray(W_total_p, dtype=jnp.bfloat16),
                  b_total=jnp.asarray(b_total_p, dtype=jnp.float32))
    meta = dict(in_size=in_size, n_levels=n_levels, max_hidden=max_hidden,
                pool_kernel=pool_kernel, out_channels=out_channels,
                d0=d0, d1=d1, d2=d2, Op=Op)
    return params, meta


# ----------------------------------------------------------------------------
# Pure-JAX factored reference (torch semantics), for the self-check.
# ----------------------------------------------------------------------------
def wavpool_reference(params, meta, x):
    B = x.shape[0]
    MH = meta["max_hidden"]
    HIGH = jax.lax.Precision.HIGHEST
    outs = []
    for lvl in params["levels"]:
        P, Q, W, b = lvl["P"], lvl["Q"], lvl["W"], lvl["b"]
        rl = jnp.einsum("rn,bnm->brm", P, x, precision=HIGH)
        rh = jnp.einsum("rn,bnm->brm", Q, x, precision=HIGH)
        details = [jnp.einsum("brm,cm->brc", rl, Q, precision=HIGH),   # LH
                   jnp.einsum("brm,cm->brc", rh, P, precision=HIGH),   # HL
                   jnp.einsum("brm,cm->brc", rh, Q, precision=HIGH)]   # HH
        per_coeff = [jnp.dot(details[c].reshape(B, -1), W[c].T, precision=HIGH) + b[c]
                     for c in range(3)]
        o = jnp.stack(per_coeff, axis=-1)                    # (B, H, 3)
        o = jnp.pad(o, ((0, 0), (MH - o.shape[1], 0), (0, 0)))
        outs.append(o)
    stacked = jnp.stack(outs, axis=-1)                       # (B, MH, 3, L)
    k0, k1, k2 = meta["pool_kernel"]
    d0, d1, d2 = meta["d0"], meta["d1"], meta["d2"]
    v = stacked[:, :d0 * k0, :d1 * k1, :d2 * k2].reshape(B, d0, k0, d1, k1, d2, k2)
    pooled = v.mean(axis=(2, 4, 6))
    flat = pooled.reshape(B, -1)
    return jnp.dot(flat, params["W_out"].T, precision=HIGH) + params["b_out"]


if __name__ == "__main__":
    key = jax.random.PRNGKey(0)
    N = 16
    params, meta = init_wavpool(
        key, in_size=N, hidden_size=32, out_channels=10,
        hidden_pooling=4, level_pooling=2, hidden_layer_scaling=True,
        pooling_mode="average")

    # Small primary case, a two-tile case, and a >batch_tile case (exercises the
    # batch grid, sublane padding and the megacore split).
    for B in (2, 192, 512):
        x = jax.random.normal(jax.random.fold_in(key, B), (B, N, N), dtype=jnp.float32)
        out = jax.block_until_ready(wavpool_forward(params, meta, x))
        ref = wavpool_reference(params, meta, x)
        assert out.shape == (B, meta["out_channels"]), out.shape
        assert bool(jnp.all(jnp.isfinite(out)))
        max_err = float(jnp.max(jnp.abs(out - ref)))
        # Kernel uses bf16 operands with f32 accumulation; reference is f32 HIGHEST.
        assert max_err < 3e-2, max_err

    print("KERNEL_OK")
</pallas_src>

<mosaic_0001>
module attributes {stable_mosaic.version = 11 : i64} {
  func.func @_wavpool_kernel(%arg0: i32, %arg1: memref<8x256xf32, #tpu.memory_space<vmem>>, %arg2: memref<256x128xbf16, #tpu.memory_space<vmem>>, %arg3: memref<1x128xf32, #tpu.memory_space<vmem>>, %arg4: memref<8x128xf32, #tpu.memory_space<vmem>>) attributes {dimension_semantics = [#tpu.dimension_semantics<parallel>], iteration_bounds = array<i64: 1>, scalar_prefetch = 0 : i64, scratch_operands = 0 : i64, tpu.core_type = #tpu.core_type<tc>, window_params = [{transform_indices = @transform_0, window_bounds = array<i64: 8, 256>}, {pipeline_mode = #tpu.pipeline_mode<synchronous>, transform_indices = @transform_1, window_bounds = array<i64: 256, 128>}, {pipeline_mode = #tpu.pipeline_mode<synchronous>, transform_indices = @transform_2, window_bounds = array<i64: 1, 128>}, {transform_indices = @transform_3, window_bounds = array<i64: 8, 128>}]} {
    %c0 = arith.constant 0 : index
    %c0_0 = arith.constant 0 : index
    %0 = vector.load %arg1[%c0, %c0_0] : memref<8x256xf32, #tpu.memory_space<vmem>>, vector<8x256xf32>
    %1 = arith.truncf %0 : vector<8x256xf32> to vector<8x256xbf16>
    %c0_1 = arith.constant 0 : index
    %c0_2 = arith.constant 0 : index
    %2 = vector.load %arg2[%c0_1, %c0_2] : memref<256x128xbf16, #tpu.memory_space<vmem>>, vector<256x128xbf16>
    %cst = arith.constant dense<0.000000e+00> : vector<8x128xf32>
    %3 = tpu.matmul %1, %2, %cst {dimension_numbers = #tpu.dot_dimension_numbers<[1], [0], [0], [1], [0, 0, 1, 1], [], []>} : vector<8x256xbf16>, vector<256x128xbf16>, vector<8x128xf32> -> vector<8x128xf32>
    %c0_3 = arith.constant 0 : index
    %c0_4 = arith.constant 0 : index
    %4 = vector.load %arg3[%c0_3, %c0_4] : memref<1x128xf32, #tpu.memory_space<vmem>>, vector<1x128xf32>
    %5 = vector.broadcast %4 : vector<1x128xf32> to vector<8x128xf32>
    %6 = arith.addf %3, %5 : vector<8x128xf32>
    %c0_5 = arith.constant 0 : index
    %c0_6 = arith.constant 0 : index
    %7 = vector.load %arg4[%c0_5, %c0_6] : memref<8x128xf32, #tpu.memory_space<vmem>>, vector<8x128xf32>
    tpu.vector_store %arg4[%c0_5, %c0_6], %6 {strides = array<i32>} : memref<8x128xf32, #tpu.memory_space<vmem>>, vector<8x128xf32>,
    return
  }
  func.func @transform_0(%arg0: i32) -> (i32, i32) {
    %c0_i32 = arith.constant 0 : i32
    %c0_i32_0 = arith.constant 0 : i32
    return %arg0, %c0_i32 : i32, i32
  }
  func.func @transform_1(%arg0: i32) -> (i32, i32) {
    %c0_i32 = arith.constant 0 : i32
    %c0_i32_0 = arith.constant 0 : i32
    %c0_i32_1 = arith.constant 0 : i32
    return %c0_i32, %c0_i32_0 : i32, i32
  }
  func.func @transform_2(%arg0: i32) -> (i32, i32) {
    %c0_i32 = arith.constant 0 : i32
    %c0_i32_0 = arith.constant 0 : i32
    %c0_i32_1 = arith.constant 0 : i32
    return %c0_i32, %c0_i32_0 : i32, i32
  }
  func.func @transform_3(%arg0: i32) -> (i32, i32) {
    %c0_i32 = arith.constant 0 : i32
    %c0_i32_0 = arith.constant 0 : i32
    return %arg0, %c0_i32 : i32, i32
  }
}

</mosaic_0001>

<bundles_post_ra>
// kernel: tpu_custom_call.1
= control target key start
LH: loop header
LB: loop body
LE: loop exit
PB: predicated region body
PF: predicated region fallthrough
CT: control target
= control target key end

     0   :  { %8 = vsyncpa [#allocation3], 0  ;;  %s441_s0 = inlined_call_operand.hbm [shape: f32[8,256], index: 0, kind: input, shape index: {}]   ;;  %s442_s1 = inlined_call_operand.hbm [shape: bf16[256,128], index: 1, kind: input, shape index: {}]   ;;  %s443_s2 = inlined_call_operand.vmem [shape: f32[1,128], index: 2, kind: input, shape index: {}]   ;;  %s444_s3 = inlined_call_operand.hbm [shape: f32[8,128], index: 3, kind: output, shape index: {}]  }
   0x1   :  { %9 = vsyncpa [#allocation6], 0 }
   0x2   :  { %10 = vsyncpa [#allocation4], 0  ;;  %s370_s12 = smov [#allocation2]   ;;  %s371_s14 = smov [#allocation5]  }
   0x3   :  { %s17_s13 = sshll.u32 %s370_s12, 4  ;;  %s26_s15 = sshll.u32 %s371_s14, 4  ;;  %s18_s13 = int_to_ptr.vmem [resolvable:$true] %s17_s13  ;;  %s395_s15 = int_to_ptr.vmem [resolvable:$true] %s26_s15 }
   0x4   :  { %s298_s18 = scalar_lea.hbm %s441_s0, 256 }
   0x5   :  { %p299_p0 = scmp.ne.s32.totalorder %s441_s0, %s298_s18  ;;  %p302_p1 = scmp.lt.u32.totalorder %s298_s18, %s441_s0 }
   0x7   :  { %p304_p2 = pnand %p302_p1, %p299_p0 }
   0x9   :  { %307 = shalt.err (!%p304_p2)
}
   0xa   :  { %s308_s23 = scalar_lea.vmem %s18_s13, 256  ;;  %p313_p4 = scmp.lt.s32.totalorder %s18_s13, %s18_s13 }
   0xb   :  { %p309_p3 = scmp.ne.s32.totalorder %s18_s13, %s308_s23  ;;  %p314_p5 = scmp.lt.s32.totalorder %s308_s23, %s308_s23 }
   0xd   :  { %p315_p6 = por %p314_p5, %p313_p4 }
   0xf   :  { %p316_p7 = pnand %p315_p6, %p309_p3 }
  0x11   :  { %319 = shalt.err (!%p316_p7)
}
  0x12   :  { %20 = dma.hbm_to_vmem [thread:$0]  %s441_s0, 256, %s18_s13, [#allocation3]  }
  0x13   :  { %s320_s28 = scalar_lea.hbm %s442_s1, 2048 }
  0x14   :  { %p321_p8 = scmp.ne.s32.totalorder %s442_s1, %s320_s28  ;;  %p324_p9 = scmp.lt.u32.totalorder %s320_s28, %s442_s1 }
  0x16   :  { %p326_p10 = pnand %p324_p9, %p321_p8 }
  0x18   :  { %329 = shalt.err (!%p326_p10)
}
  0x19   :  { %s330_s6 = scalar_lea.vmem %s395_s15, 2048  ;;  %p335_p12 = scmp.lt.s32.totalorder %s395_s15, %s395_s15 }
  0x1a   :  { %p331_p11 = scmp.ne.s32.totalorder %s395_s15, %s330_s6  ;;  %p336_p13 = scmp.lt.s32.totalorder %s330_s6, %s330_s6 }
  0x1c   :  { %p337_p0 = por %p336_p13, %p335_p12 }
  0x1e   :  { %p338_p1 = pnand %p337_p0, %p331_p11 }
  0x20   :  { %341 = shalt.err (!%p338_p1)
}
  0x21   :  { %s372_s0 = smov 64   ;;  %s373_s7 = smov 4  }
  0x22   :  { %32 = dma.hbm_to_vmem [thread:$0]  %s442_s1, 2048, %s395_s15, [#allocation6], %s372_s0, %s372_s0, %s373_s7  }
  0x23   :  { %364 = dma.done.wait [#allocation3], 256  }
  0x24   :  { %365 = vsyncadd [#allocation3], 4294967040 }
  0x25   :  { %366 = dma.done.wait [#allocation6], 2048  }
  0x26   :  { %367 = vsyncadd [#allocation6], 4294965248  ;;  %v282_v0 = vld [vmem:[#allocation5 + $0x40] sm:$0xff]   ;;  %v284_v2 = vld [vmem:[#allocation5 + $0x48] sm:$0xff]   ;;  %s374_s11 = smov [#allocation7]  }
  0x27   :  { %v283_v1 = vld [vmem:[#allocation5] sm:$0xff]   ;;  %255 = vmatprep.subr.bf16.mxu0 %v282_v0  ;;  %v285_v3 = vld [vmem:[#allocation5 + $0x8] sm:$0xff]   ;;  %v286_v4 = vld [vmem:[#allocation5 + $0x50] sm:$0xff]   ;;  %s228_s12 = sshll.u32 %s374_s11, 4  ;;  %s229_s12 = int_to_ptr.vmem [resolvable:$true] %s228_s12 }
  0x28   :  { %256 = vmatpush3.bf16.msra.mxu0 %v283_v1  ;;  %v287_v5 = vld [vmem:[#allocation5 + $0x10] sm:$0xff]   ;;  %v288_v6 = vld [vmem:[#allocation5 + $0x58] sm:$0xff]   ;;  %v290_v8 = vld [vmem:[#allocation5 + $0x60] sm:$0xff]   ;;  %s342_s13 = scalar_lea.vmem %s229_s12, 128  ;;  %p347_p3 = scmp.lt.s32.totalorder %s229_s12, %s229_s12 }
  0x29   :  { %257 = vmatprep.subr.bf16.mxu0 %v284_v2  ;;  %v289_v7 = vld [vmem:[#allocation5 + $0x18] sm:$0xff]   ;;  %v291_v9 = vld [vmem:[#allocation5 + $0x20] sm:$0xff]   ;;  %v292_v10 = vld [vmem:[#allocation5 + $0x68] sm:$0xff]   ;;  %p343_p2 = scmp.ne.s32.totalorder %s229_s12, %s342_s13  ;;  %p348_p4 = scmp.lt.s32.totalorder %s342_s13, %s342_s13 }
  0x2a   :  { %v43_v11 = vld [vmem:[#allocation2 + $0x8] sm:$0xff]  ;;  %v293_v13 = vld [vmem:[#allocation5 + $0x28] sm:$0xff]   ;;  %v294_v14 = vld [vmem:[#allocation5 + $0x70] sm:$0xff]  }
  0x2b   :  { %v45_v12 = vpack.c.bf16 %v43_v11, %v43_v11  ;;  %v295_v15 = vld [vmem:[#allocation5 + $0x30] sm:$0xff]   ;;  %v296_v16 = vld [vmem:[#allocation5 + $0x78] sm:$0xff]   ;;  %p349_p5 = por %p348_p4, %p347_p3 }
  0x2c   :  { %258 = vmatpush3.bf16.msra.mxu0 %v285_v3  ;;  %v297_v17 = vld [vmem:[#allocation5 + $0x38] sm:$0xff]   ;;  %v42_v18 = vld [vmem:[#allocation2] sm:$0xff] }
  0x2d   :  { %259 = vmatprep.subr.bf16.mxu0 %v286_v4  ;;  %213 = vmatprep.mubr.bf16.mxu0 %v45_v12  ;;  %v44_v19 = vpack.c.bf16 %v42_v18, %v42_v18  ;;  %v238_v21 = vld [vmem:[%s443_s2] ss:$0 sm:$0xff]  ;;  %p350_p6 = pnand %p349_p5, %p343_p2 }
  0x30   :  { %260 = vmatpush3.bf16.msra.mxu0 %v287_v5 }
  0x31   :  { %261 = vmatprep.subr.bf16.mxu0 %v288_v6 }
  0x34   :  { %262 = vmatpush3.bf16.msra.mxu0 %v289_v7 }
  0x35   :  { %263 = vmatprep.subr.bf16.mxu0 %v290_v8 }
  0x38   :  { %264 = vmatpush3.bf16.msra.mxu0 %v291_v9 }
  0x39   :  { %265 = vmatprep.subr.bf16.mxu0 %v292_v10 }
  0x3c   :  { %266 = vmatpush3.bf16.msra.mxu0 %v293_v13 }
  0x3d   :  { %267 = vmatprep.subr.bf16.mxu0 %v294_v14 }
  0x40   :  { %268 = vmatpush3.bf16.msra.mxu0 %v295_v15 }
  0x41   :  { %269 = vmatprep.subr.bf16.mxu0 %v296_v16 }
  0x44   :  { %270 = vmatpush3.bf16.msra.mxu0 %v297_v17 }
  0x47   :  { %214 = vmatmul.mubr.bf16.vlgmr.msra.gmra.mrb[0].mxu0 %v44_v19 }
 0x11a   :  { %v271_v20 = vpop.f32.mrb[0].mxu0 }
 0x11b   :  { %v272_v22 = vpop.f32.mrb[1].mxu0 }
 0x11c   :  { %v273_v23 = vadd.f32 %v272_v22, %v271_v20  ;;  %v274_v24 = vpop.f32.mrb[2].mxu0 }
 0x11d   :  { %v275_v25 = vpop.f32.mrb[3].mxu0 }
 0x11e   :  { %v216_v26 = vadd.f32 %v273_v23, %v238_v21 }
 0x120   :  { %221 = vst [vmem:[#allocation7] sm:$0xff] %v216_v26 }
 0x121   :  { %353 = shalt.err (!%p350_p6)
}
 0x122   :  { %s354_s2 = scalar_lea.hbm %s444_s3, 128 }
 0x123   :  { %p355_p7 = scmp.ne.s32.totalorder %s444_s3, %s354_s2  ;;  %p358_p8 = scmp.lt.u32.totalorder %s354_s2, %s444_s3 }
 0x125   :  { %p360_p9 = pnand %p358_p8, %p355_p7 }
 0x127   :  { %363 = shalt.err (!%p360_p9)
}
 0x128   :  { %231 = dma.vmem_to_hbm [thread:$0]  %s229_s12, 128, %s444_s3, [#allocation4]  }
 0x129   :  { %368 = dma.done.wait [#allocation4], 128  }
 0x12a   :  { %369 = vsyncadd [#allocation4], 4294967168 }
 0x12b   :  { %235 = vsyncpa [#allocation3], 1 }
 0x12c   :  { %236 = vsyncpa [#allocation6], 1 }
 0x12d   :  { %237 = vsyncpa [#allocation4], 1 }

</bundles_post_ra>
